<compile_context>
chip_gen: v5e
topology: v5e:2x2
jax: 0.10.0
libtpu: 0.0.40
codegen_flags: <defaults>
</compile_context>

<pallas_src>
import functools

import jax
import jax.numpy as jnp
from jax import lax
from jax.experimental import pallas as pl
from jax.experimental.pallas import tpu as pltpu

_LANES = 128
_SUBLANES = 8
_ROW_CHUNK = 512     # rows per in-kernel compute chunk (bounds live f32 temporaries)


# --------------------------------------------------------------------------- #
# Small helpers
# --------------------------------------------------------------------------- #
def _cdiv(a, b):
    return -(-a // b)


def _round_up(a, b):
    return _cdiv(a, b) * b


def _budgets():
    """(packed_block_bytes, simple_block_bytes, vmem_limit_bytes), generation-aware.

    v7x-class TensorCores (64 MiB VMEM, ~3.2 TB/s HBM): bigger blocks to amortize the
    ~0.35 us per-grid-step overhead.  v5e/v6e (128 MiB VMEM, slower HBM): 2-4 MiB
    blocks already keep step overhead <10%, so stay conservative.
    """
    packed, simple, limit = 4 << 20, 3 << 20, 32 << 20
    try:
        info = pltpu.get_tpu_info()
        cap = getattr(info, "vmem_capacity_bytes", None) or getattr(info, "vmem_bytes", None)
        if cap is not None and cap <= (80 << 20):      # v7x-class core
            packed, simple, limit = 6 << 20, 4 << 20, 44 << 20
    except Exception:                                   # unknown backend -> safe defaults
        pass
    return packed, simple, limit


def _compiler_params(n_grid_axes, vmem_limit):
    return pltpu.CompilerParams(
        dimension_semantics=("parallel",) * n_grid_axes,
        vmem_limit_bytes=vmem_limit,
    )


def _pick_tile(extent, quantum, max_tile, prefer_multi=True):
    """Block size along one axis: either == extent or a multiple of `quantum`.

    When `prefer_multi`, nudge the grid toward an even number of >= 2 steps so both
    v7x TensorCores get work (harmless on v5e/v6e single-core chips).
    """
    if extent <= quantum:
        return extent
    max_tile = max(quantum, (max_tile // quantum) * quantum)
    tile = extent if extent <= max_tile else max_tile
    if not prefer_multi:
        return tile
    steps = _cdiv(extent, tile)
    if steps == 1 and extent >= 2 * quantum:
        tile = _round_up(_cdiv(extent, 2), quantum)
    elif steps % 2 == 1 and steps <= 7 and extent >= (steps + 1) * quantum:
        tile = _round_up(_cdiv(extent, steps + 1), quantum)
    return tile


# --------------------------------------------------------------------------- #
# Kernels
# --------------------------------------------------------------------------- #
def _ln_rows_packed_kernel(x_ref, seg_ref, w_ref, b_ref, o_ref, *,
                           eps, inv_c, chunk, exact_in_bf16):
    """G = 128 // C rows packed per 128-wide lane row (lane-dense loads/stores).

    `seg` is a block-diagonal (128, 128) matrix of bf16 ones (exact for any C);
    x @ seg computes each C-wide segment's sum on the otherwise-idle MXU and
    broadcasts it across the segment; the 1/C scale is applied in f32 afterwards.
    f32 operands are split into bf16 hi/lo parts so two exact bf16 MXU passes give
    ~f32 accuracy; bf16 inputs skip the lo pass for the mean (hi == x exactly).
    The inner chunk loop bounds live f32 temporaries to ~chunk rows so the DMA
    block (bm rows) can be large without blowing the scoped-VMEM budget.
    """
    seg = seg_ref[...]
    w = w_ref[...]
    b = b_ref[...]
    bm = x_ref.shape[0]

    def seg_mean(v, exact):
        hi = v.astype(jnp.bfloat16)
        s = jnp.dot(hi, seg, preferred_element_type=jnp.float32)
        if not exact:
            lo = (v - hi.astype(jnp.float32)).astype(jnp.bfloat16)
            s = s + jnp.dot(lo, seg, preferred_element_type=jnp.float32)
        return s * inv_c

    def do_rows(r0, nrows):
        x = x_ref[pl.ds(r0, nrows), :].astype(jnp.float32)
        mean = seg_mean(x, exact_in_bf16)
        xc = x - mean
        var = seg_mean(xc * xc, False)                 # biased variance (matches PyTorch)
        scale = lax.rsqrt(var + eps) * w
        o_ref[pl.ds(r0, nrows), :] = (xc * scale + b).astype(o_ref.dtype)

    if bm <= chunk:
        do_rows(0, bm)
    else:
        n_full = bm // chunk

        def body(i, carry):
            do_rows(pl.multiple_of(i * chunk, chunk), chunk)
            return carry

        lax.fori_loop(0, n_full, body, 0)
        rem = bm - n_full * chunk
        if rem:
            do_rows(n_full * chunk, rem)


def _ln_rows_kernel(x_ref, w_ref, b_ref, o_ref, *, eps):
    """General path: normalize each row of the (bm, C) block over C."""
    x = x_ref[...].astype(jnp.float32)
    mean = jnp.mean(x, axis=-1, keepdims=True)
    xc = x - mean
    var = jnp.mean(xc * xc, axis=-1, keepdims=True)
    scale = lax.rsqrt(var + eps) * w_ref[...]
    o_ref[...] = (xc * scale + b_ref[...]).astype(o_ref.dtype)


def _ln_cfirst_kernel(x_ref, w_ref, b_ref, o_ref, *, eps):
    """channels_first: block is (bn, C, bhw); reduce over C (sublane axis)."""
    x = x_ref[...].astype(jnp.float32)
    mean = jnp.mean(x, axis=1, keepdims=True)
    xc = x - mean
    var = jnp.mean(xc * xc, axis=1, keepdims=True)
    inv = lax.rsqrt(var + eps)
    o_ref[...] = (xc * inv * w_ref[...] + b_ref[...]).astype(o_ref.dtype)


# --------------------------------------------------------------------------- #
# Wrappers
# --------------------------------------------------------------------------- #
def _general_rows(x2d, w32, b32, eps, simple_bytes, vmem_limit):
    R, C = x2d.shape
    padded_c = _round_up(C, _LANES)                    # lane padding in VMEM
    max_rows = max(_SUBLANES, simple_bytes // (padded_c * 4))   # f32 working-set bound
    bm = _pick_tile(R, _SUBLANES, max_rows)
    grid = (_cdiv(R, bm),)

    return pl.pallas_call(
        functools.partial(_ln_rows_kernel, eps=eps),
        out_shape=jax.ShapeDtypeStruct((R, C), x2d.dtype),
        grid_spec=pltpu.PrefetchScalarGridSpec(
            num_scalar_prefetch=0,
            grid=grid,
            in_specs=[
                pl.BlockSpec((bm, C), lambda i: (i, 0)),
                pl.BlockSpec((1, C), lambda i: (0, 0)),
                pl.BlockSpec((1, C), lambda i: (0, 0)),
            ],
            out_specs=pl.BlockSpec((bm, C), lambda i: (i, 0)),
        ),
        compiler_params=_compiler_params(1, vmem_limit),
    )(x2d, w32.reshape(1, C), b32.reshape(1, C))


def _layer_norm_rows(x2d, weight, bias, eps):
    """Normalize each row of x2d (R, C) over C; affine with f32 weight/bias (C,)."""
    R, C = x2d.shape
    w32 = weight.astype(jnp.float32)
    b32 = bias.astype(jnp.float32)
    packed_bytes, simple_bytes, vmem_limit = _budgets()

    packable = (C < _LANES) and (_LANES % C == 0)
    if packable:
        G = _LANES // C
        rem = R % G
        if rem != 0 and 2 * C >= _LANES:
            # Misaligned rows at C=64: a single lane-sparse pass over the original
            # layout is no worse than the 3 HBM passes lane-dense repacking needs.
            packable = False

    if not packable:
        return _general_rows(x2d, w32, b32, eps, simple_bytes, vmem_limit)

    G = _LANES // C
    rem = R % G
    if rem:
        # Misaligned row count: pad/slice costs two extra HBM passes, which is the
        # floor for any lane-dense repacking at the XLA boundary.  Keep call-site
        # row counts (N*H*W) divisible by G to stay on the copy-free path.
        x2d = jnp.pad(x2d, ((0, G - rem), (0, 0)))
    Rp = x2d.shape[0] // G
    xp = x2d.reshape(Rp, _LANES)                       # free reshape (trailing dims merge)

    lane = jnp.arange(_LANES)
    # Block-diagonal matrix of ones: exact in bf16; 1/C applied in f32 in-kernel.
    seg = ((lane[:, None] // C) == (lane[None, :] // C)).astype(jnp.bfloat16)
    wp = jnp.tile(w32, G).reshape(1, _LANES)
    bp = jnp.tile(b32, G).reshape(1, _LANES)

    itemsize = xp.dtype.itemsize
    # DMA block rows bounded by the HBM-block budget; in-kernel f32 temporaries are
    # bounded separately by the _ROW_CHUNK loop, so bf16 inputs get 2x rows/block.
    max_rows = max(_SUBLANES, packed_bytes // (_LANES * itemsize))
    bm = _pick_tile(Rp, _SUBLANES, max_rows)
    chunk = min(_ROW_CHUNK, bm)
    grid = (_cdiv(Rp, bm),)

    yp = pl.pallas_call(
        functools.partial(
            _ln_rows_packed_kernel,
            eps=eps,
            inv_c=1.0 / C,
            chunk=chunk,
            exact_in_bf16=(xp.dtype == jnp.bfloat16),
        ),
        out_shape=jax.ShapeDtypeStruct((Rp, _LANES), xp.dtype),
        grid_spec=pltpu.PrefetchScalarGridSpec(
            num_scalar_prefetch=0,
            grid=grid,
            in_specs=[
                pl.BlockSpec((bm, _LANES), lambda i: (i, 0)),
                pl.BlockSpec((_LANES, _LANES), lambda i: (0, 0)),
                pl.BlockSpec((1, _LANES), lambda i: (0, 0)),
                pl.BlockSpec((1, _LANES), lambda i: (0, 0)),
            ],
            out_specs=pl.BlockSpec((bm, _LANES), lambda i: (i, 0)),
        ),
        compiler_params=_compiler_params(1, vmem_limit),
    )(xp, seg, wp, bp)

    y2d = yp.reshape(-1, C)
    return y2d[:R] if rem else y2d


def _layer_norm_channels_first(x, weight, bias, eps):
    """x: (N, C, H, W), normalized over C — fused kernel, no HBM transposes."""
    N, C, H, W = x.shape
    HW = H * W
    x3 = x.reshape(N, C, HW)                           # free reshape
    w3 = weight.astype(jnp.float32).reshape(1, C, 1)
    b3 = bias.astype(jnp.float32).reshape(1, C, 1)

    _, simple_bytes, vmem_limit = _budgets()
    padded_c = _round_up(C, _SUBLANES)                 # sublane padding when C < 8
    plane_bytes = padded_c * _round_up(HW, _LANES) * 4  # f32, padded VMEM footprint

    if plane_bytes <= simple_bytes:
        bhw = HW
        bn_max = max(1, simple_bytes // plane_bytes)
        bn = _pick_tile(N, 1, bn_max)
        if _cdiv(N, bn) == 1 and HW >= 2 * _LANES:
            bhw = _pick_tile(HW, _LANES, HW)
    else:
        bn = 1
        bhw_max = max(_LANES, simple_bytes // (padded_c * 4))
        bhw = _pick_tile(HW, _LANES, bhw_max, prefer_multi=(N == 1))

    grid = (_cdiv(N, bn), _cdiv(HW, bhw))

    y3 = pl.pallas_call(
        functools.partial(_ln_cfirst_kernel, eps=eps),
        out_shape=jax.ShapeDtypeStruct((N, C, HW), x.dtype),
        grid_spec=pltpu.PrefetchScalarGridSpec(
            num_scalar_prefetch=0,
            grid=grid,
            in_specs=[
                pl.BlockSpec((bn, C, bhw), lambda i, j: (i, 0, j)),
                pl.BlockSpec((1, C, 1), lambda i, j: (0, 0, 0)),
                pl.BlockSpec((1, C, 1), lambda i, j: (0, 0, 0)),
            ],
            out_specs=pl.BlockSpec((bn, C, bhw), lambda i, j: (i, 0, j)),
        ),
        compiler_params=_compiler_params(2, vmem_limit),
    )(x3, w3, b3)
    return y3.reshape(N, C, H, W)


def layer_norm(x, weight, bias, eps=1e-6, data_format="channels_last"):
    """Pallas LayerNorm matching models/fusenet.py::LayerNorm.forward."""
    if data_format == "channels_last":
        C = x.shape[-1]
        orig_shape = x.shape
        y2d = _layer_norm_rows(x.reshape(-1, C), weight, bias, eps)
        return y2d.reshape(orig_shape)
    elif data_format == "channels_first":
        return _layer_norm_channels_first(x, weight, bias, eps)
    else:
        raise NotImplementedError(data_format)


# --------------------------------------------------------------------------- #
# Reference + tests
# --------------------------------------------------------------------------- #
def _reference_layer_norm(x, weight, bias, eps, data_format):
    if data_format == "channels_last":
        u = jnp.mean(x, axis=-1, keepdims=True)
        s = jnp.mean((x - u) ** 2, axis=-1, keepdims=True)
        return (x - u) / jnp.sqrt(s + eps) * weight + bias
    u = jnp.mean(x, axis=1, keepdims=True)
    s = jnp.mean((x - u) ** 2, axis=1, keepdims=True)
    xh = (x - u) / jnp.sqrt(s + eps)
    return weight[None, :, None, None] * xh + bias[None, :, None, None]


if __name__ == "__main__":
    key = jax.random.PRNGKey(0)
    keys = jax.random.split(key, 10)
    eps = 1e-6

    # ---- channels_last, C=32, rows divisible by G=4 (copy-free packed MXU path) ----
    C = 32
    x = jax.random.normal(keys[0], (2, 8, 8, C), dtype=jnp.float32)
    w = 1.0 + 0.1 * jax.random.normal(keys[1], (C,), dtype=jnp.float32)
    b = 0.1 * jax.random.normal(keys[2], (C,), dtype=jnp.float32)
    y = jax.block_until_ready(layer_norm(x, w, b, eps, "channels_last"))
    ref = _reference_layer_norm(x, w, b, eps, "channels_last")
    assert jnp.allclose(y, ref, atol=1e-4, rtol=1e-4), "channels_last C=32 mismatch"

    # ---- same shape, bfloat16 input (exercises the single-matmul bf16 fast path) ----
    xb = x.astype(jnp.bfloat16)
    yb = jax.block_until_ready(layer_norm(xb, w, b, eps, "channels_last"))
    refb = _reference_layer_norm(xb.astype(jnp.float32), w, b, eps, "channels_last")
    assert jnp.allclose(yb.astype(jnp.float32), refb, atol=3e-2, rtol=3e-2), "bf16 mismatch"

    # ---- channels_last, C=32, row count not divisible by the packing factor ----
    x = jax.random.normal(keys[3], (3, 5, C), dtype=jnp.float32)
    y = jax.block_until_ready(layer_norm(x, w, b, eps, "channels_last"))
    ref = _reference_layer_norm(x, w, b, eps, "channels_last")
    assert jnp.allclose(y, ref, atol=1e-4, rtol=1e-4), "channels_last padded mismatch"

    # ---- channels_last, C=192 (general wide-C path, exact f32 reductions) ----
    C = 192
    x = jax.random.normal(keys[4], (2, 4, C), dtype=jnp.float32)
    w = 1.0 + 0.1 * jax.random.normal(keys[5], (C,), dtype=jnp.float32)
    b = 0.1 * jax.random.normal(keys[6], (C,), dtype=jnp.float32)
    y = jax.block_until_ready(layer_norm(x, w, b, eps, "channels_last"))
    ref = _reference_layer_norm(x, w, b, eps, "channels_last")
    assert jnp.allclose(y, ref, atol=1e-5, rtol=1e-5), "channels_last C=192 mismatch"

    # ---- channels_first, (N, C, H, W) = (2, 4, 16, 16), fused (no transposes) ----
    C = 4
    x = jax.random.normal(keys[7], (2, C, 16, 16), dtype=jnp.float32)
    w = 1.0 + 0.1 * jax.random.normal(keys[8], (C,), dtype=jnp.float32)
    b = 0.1 * jax.random.normal(keys[9], (C,), dtype=jnp.float32)
    y = jax.block_until_ready(layer_norm(x, w, b, eps, "channels_first"))
    ref = _reference_layer_norm(x, w, b, eps, "channels_first")
    assert jnp.allclose(y, ref, atol=1e-5, rtol=1e-5), "channels_first mismatch"

    print("KERNEL_OK")
</pallas_src>

<mosaic_0001>
module attributes {stable_mosaic.version = 11 : i64} {
  func.func @_ln_rows_packed_kernel(%arg0: i32, %arg1: memref<16x128xf32, #tpu.memory_space<vmem>>, %arg2: memref<128x128xbf16, #tpu.memory_space<vmem>>, %arg3: memref<1x128xf32, #tpu.memory_space<vmem>>, %arg4: memref<1x128xf32, #tpu.memory_space<vmem>>, %arg5: memref<16x128xf32, #tpu.memory_space<vmem>>) attributes {dimension_semantics = [#tpu.dimension_semantics<parallel>], iteration_bounds = array<i64: 2>, scalar_prefetch = 0 : i64, scratch_operands = 0 : i64, tpu.core_type = #tpu.core_type<tc>, window_params = [{transform_indices = @transform_0, window_bounds = array<i64: 16, 128>}, {pipeline_mode = #tpu.pipeline_mode<synchronous>, transform_indices = @transform_1, window_bounds = array<i64: 128, 128>}, {pipeline_mode = #tpu.pipeline_mode<synchronous>, transform_indices = @transform_2, window_bounds = array<i64: 1, 128>}, {pipeline_mode = #tpu.pipeline_mode<synchronous>, transform_indices = @transform_3, window_bounds = array<i64: 1, 128>}, {transform_indices = @transform_4, window_bounds = array<i64: 16, 128>}]} {
    %c0 = arith.constant 0 : index
    %c0_0 = arith.constant 0 : index
    %0 = vector.load %arg2[%c0, %c0_0] : memref<128x128xbf16, #tpu.memory_space<vmem>>, vector<128x128xbf16>
    %c0_1 = arith.constant 0 : index
    %c0_2 = arith.constant 0 : index
    %1 = vector.load %arg3[%c0_1, %c0_2] : memref<1x128xf32, #tpu.memory_space<vmem>>, vector<1x128xf32>
    %c0_3 = arith.constant 0 : index
    %c0_4 = arith.constant 0 : index
    %2 = vector.load %arg4[%c0_3, %c0_4] : memref<1x128xf32, #tpu.memory_space<vmem>>, vector<1x128xf32>
    %c0_5 = arith.constant 0 : index
    %c0_6 = arith.constant 0 : index
    %3 = vector.load %arg1[%c0_5, %c0_6] : memref<16x128xf32, #tpu.memory_space<vmem>>, vector<16x128xf32>
    %4 = arith.truncf %3 : vector<16x128xf32> to vector<16x128xbf16>
    %cst = arith.constant dense<0.000000e+00> : vector<16x128xf32>
    %5 = tpu.matmul %4, %0, %cst {dimension_numbers = #tpu.dot_dimension_numbers<[1], [0], [0], [1], [0, 0, 1, 1], [], []>} : vector<16x128xbf16>, vector<128x128xbf16>, vector<16x128xf32> -> vector<16x128xf32>
    %6 = arith.extf %4 : vector<16x128xbf16> to vector<16x128xf32>
    %7 = arith.subf %3, %6 : vector<16x128xf32>
    %8 = arith.truncf %7 : vector<16x128xf32> to vector<16x128xbf16>
    %cst_7 = arith.constant dense<0.000000e+00> : vector<16x128xf32>
    %9 = tpu.matmul %8, %0, %cst_7 {dimension_numbers = #tpu.dot_dimension_numbers<[1], [0], [0], [1], [0, 0, 1, 1], [], []>} : vector<16x128xbf16>, vector<128x128xbf16>, vector<16x128xf32> -> vector<16x128xf32>
    %10 = arith.addf %5, %9 : vector<16x128xf32>
    %cst_8 = arith.constant 3.125000e-02 : f32
    %11 = vector.broadcast %cst_8 : f32 to vector<16x128xf32>
    %12 = arith.mulf %10, %11 : vector<16x128xf32>
    %13 = arith.subf %3, %12 : vector<16x128xf32>
    %14 = arith.mulf %13, %13 : vector<16x128xf32>
    %15 = arith.truncf %14 : vector<16x128xf32> to vector<16x128xbf16>
    %cst_9 = arith.constant dense<0.000000e+00> : vector<16x128xf32>
    %16 = tpu.matmul %15, %0, %cst_9 {dimension_numbers = #tpu.dot_dimension_numbers<[1], [0], [0], [1], [0, 0, 1, 1], [], []>} : vector<16x128xbf16>, vector<128x128xbf16>, vector<16x128xf32> -> vector<16x128xf32>
    %17 = arith.extf %15 : vector<16x128xbf16> to vector<16x128xf32>
    %18 = arith.subf %14, %17 : vector<16x128xf32>
    %19 = arith.truncf %18 : vector<16x128xf32> to vector<16x128xbf16>
    %cst_10 = arith.constant dense<0.000000e+00> : vector<16x128xf32>
    %20 = tpu.matmul %19, %0, %cst_10 {dimension_numbers = #tpu.dot_dimension_numbers<[1], [0], [0], [1], [0, 0, 1, 1], [], []>} : vector<16x128xbf16>, vector<128x128xbf16>, vector<16x128xf32> -> vector<16x128xf32>
    %21 = arith.addf %16, %20 : vector<16x128xf32>
    %cst_11 = arith.constant 3.125000e-02 : f32
    %22 = vector.broadcast %cst_11 : f32 to vector<16x128xf32>
    %23 = arith.mulf %21, %22 : vector<16x128xf32>
    %cst_12 = arith.constant 9.99999997E-7 : f32
    %24 = vector.broadcast %cst_12 : f32 to vector<16x128xf32>
    %25 = arith.addf %23, %24 : vector<16x128xf32>
    %26 = math.rsqrt %25 : vector<16x128xf32>
    %27 = vector.broadcast %1 : vector<1x128xf32> to vector<16x128xf32>
    %28 = arith.mulf %26, %27 : vector<16x128xf32>
    %29 = arith.mulf %13, %28 : vector<16x128xf32>
    %30 = vector.broadcast %2 : vector<1x128xf32> to vector<16x128xf32>
    %31 = arith.addf %29, %30 : vector<16x128xf32>
    %c0_13 = arith.constant 0 : index
    %c0_14 = arith.constant 0 : index
    %32 = vector.load %arg5[%c0_13, %c0_14] : memref<16x128xf32, #tpu.memory_space<vmem>>, vector<16x128xf32>
    tpu.vector_store %arg5[%c0_13, %c0_14], %31 {strides = array<i32>} : memref<16x128xf32, #tpu.memory_space<vmem>>, vector<16x128xf32>,
    return
  }
  func.func @transform_0(%arg0: i32) -> (i32, i32) {
    %c0_i32 = arith.constant 0 : i32
    %c0_i32_0 = arith.constant 0 : i32
    return %arg0, %c0_i32 : i32, i32
  }
  func.func @transform_1(%arg0: i32) -> (i32, i32) {
    %c0_i32 = arith.constant 0 : i32
    %c0_i32_0 = arith.constant 0 : i32
    %c0_i32_1 = arith.constant 0 : i32
    return %c0_i32, %c0_i32_0 : i32, i32
  }
  func.func @transform_2(%arg0: i32) -> (i32, i32) {
    %c0_i32 = arith.constant 0 : i32
    %c0_i32_0 = arith.constant 0 : i32
    %c0_i32_1 = arith.constant 0 : i32
    return %c0_i32, %c0_i32_0 : i32, i32
  }
  func.func @transform_3(%arg0: i32) -> (i32, i32) {
    %c0_i32 = arith.constant 0 : i32
    %c0_i32_0 = arith.constant 0 : i32
    %c0_i32_1 = arith.constant 0 : i32
    return %c0_i32, %c0_i32_0 : i32, i32
  }
  func.func @transform_4(%arg0: i32) -> (i32, i32) {
    %c0_i32 = arith.constant 0 : i32
    %c0_i32_0 = arith.constant 0 : i32
    return %arg0, %c0_i32 : i32, i32
  }
}

</mosaic_0001>

<bundles_post_ra>
// kernel: tpu_custom_call.1
= control target key start
LH: loop header
LB: loop body
LE: loop exit
PB: predicated region body
PF: predicated region fallthrough
CT: control target
= control target key end

     0   :  { %9 = vsyncpa [#allocation3], 0  ;;  %s971_s0 = inlined_call_operand.hbm [shape: f32[32,128], index: 0, kind: input, shape index: {}]   ;;  %s972_s1 = inlined_call_operand.hbm [shape: bf16[128,128], index: 1, kind: input, shape index: {}]   ;;  %s973_s2 = inlined_call_operand.vmem [shape: f32[1,128], index: 2, kind: input, shape index: {}]   ;;  %s974_s3 = inlined_call_operand.vmem [shape: f32[1,128], index: 3, kind: input, shape index: {}]   ;;  %s975_s4 = inlined_call_operand.hbm [shape: f32[32,128], index: 4, kind: output, shape index: {}]  }
   0x1   :  { %11 = vsyncpa [#allocation3 + $0x1], 0 }
   0x2   :  { %12 = vsyncpa [#allocation6], 0 }
   0x3   :  { %13 = vsyncpa [#allocation4], 0 }
   0x4   :  { %15 = vsyncpa [#allocation4 + $0x1], 0  ;;  %s821_s15 = smov 0   ;;  %s823_s16 = smov 0  }
   0x5   :  { %s825_s17 = smov 0   ;;  %s827_s18 = smov 0  }
   0x6 LB: > { %s842_s19 = sadd.s32 4294967295, %s787_s18   ;;  %s530_s20 = sadd.s32 4294967294, %s787_s18   ;;  %s787_s18 = sphi %s827_s18, %s985_s18   ;;  %s783_s17 = sphi %s825_s17, %s984_s17   ;;  %s779_s16 = sphi %s823_s16, %s983_s16   ;;  %s775_s15 = sphi %s821_s15, %s982_s15  }
   0x7   : > { %p41_p0 = scmp.ne.s32.totalorder %s779_s16, %s775_s15  ;;  %p42_p1 = scmp.eq.s32.totalorder %s842_s19, 0 }
   0x8   : > { %p128_p2 = scmp.eq.s32.totalorder %s842_s19, 1  ;;  %p134_p3 = scmp.eq.s32.totalorder %s530_s20, 1 }
   0x9   : > { %p851_p4 = por %p42_p1, %p41_p0  ;;  %p531_p5 = scmp.ge.s32.totalorder %s787_s18, 1 }
   0xa   : > { %p856_p6 = por %p134_p3, %p41_p0  ;;  %p141_p7 = scmp.lt.s32.totalorder %s787_s18, 3 }
   0xb   : > { %s152_s25 = sshll.u32 %s972_s1, 4  ;;  %s789_s27 = smov [#allocation5]   ;;  %s153_s25 = int_to_ptr.hbm [resolvable:$true] %s152_s25 }
   0xc   : > { %p864_p8 = pnand %p531_p5, %p141_p7  ;;  %s154_s28 = sshll.u32 %s789_s27, 4  ;;  %s155_s28 = int_to_ptr.vmem [resolvable:$true] %s154_s28 }
   0xd   : > { %s874_s29 = sadd.s32 1, %s787_s18   ;;  %s790_s30 = smov 64  }
   0xe   : > { %p596_p9 = pneg %p864_p8  ;;  %s791_s5 = smov 4  }
   0xf   : > { %s25_s6 = ssub.s32 %s787_s18, %s874_s29  ;;  %s28_s7 = sadd.s32 1, %s783_s17 }
  0x10   : > { %p597_p10 = pnand %p596_p9, %p42_p1  ;;  %p26_p12 = scmp.eq.s32.totalorder %s25_s6, 0 }
  0x11   : > { %p35_p13 = scmp.ne.s32.totalorder %s783_s17, %s779_s16  ;;  %p36_p0 = scmp.eq.s32.totalorder %s787_s18, 0 }
  0x12   : > { %599 = dma.hbm_to_vmem [thread:$0]  (!%p597_p10), %s153_s25, 1024, %s155_s28, [#allocation6], %s790_s30, %s790_s30, %s791_s5  }
  0x13   : > { %p609_p3 = scmp.lt.s32.totalorder %s787_s18, 2  ;;  %p37_p5 = por %p36_p0, %p35_p13 }
  0x14   : > { %s884_s8 = scalar_select %p26_p12, %s783_s17, %s28_s7  }
  0x15   : > { %p888_p7 = por %p128_p2, %p35_p13  ;;  %s174_s10 = sand.u32 1, %s783_s17  }
  0x16   : > { %s578_s11 = sshll.u32 %s787_s18, 4  ;;  %s534_s12 = sshll.u32 %s174_s10, 4 }
  0x17   : > { %s183_s20 = scalar_lea.hbm %s971_s0, %s578_s11  ;;  %s178_s24 = scalar_lea.vmem [#allocation2], %s534_s12 }
  0x18   : > { %s184_s23 = sshll.u32 %s183_s20, 4  ;;  %s186_s25 = sshll.u32 %s178_s24, 4  ;;  %s185_s23 = int_to_ptr.hbm [resolvable:$true] %s184_s23  ;;  %s187_s25 = int_to_ptr.vmem [resolvable:$true] %s186_s25 }
  0x19   : > { %p899_p9 = pnand %p609_p3, %p37_p5  ;;  %s175_s28 = scalar_lea.sflag [#allocation3], %s174_s10 }
  0x1a   : > { %s687_s30 = sshra.s32 %s185_s23, 4  ;;  %s694_s11 = scalar_lea.hbm %s971_s0, 32  ;;  %s688_s30 = int_to_ptr.hbm [resolvable:$true] %s687_s30 }
  0x1b   : > { %s689_s5 = scalar_lea.hbm %s688_s30, 16  ;;  %p691_p10 = pneg %p899_p9 }
  0x1c   : > { %p690_p2 = scmp.ne.s32.totalorder %s688_s30, %s689_s5  ;;  %p695_p0 = scmp.lt.s32.totalorder %s688_s30, %s971_s0 }
  0x1d   : > { %p696_p3 = scmp.lt.s32.totalorder %s694_s11, %s689_s5 }
  0x1e   : > { %p692_p12 = pnand %p691_p10, %p690_p2 }
  0x1f   : > { %p697_p5 = por %p696_p3, %p695_p0 }
  0x20   : > { %p693_p13 = pneg %p692_p12 }
  0x22   : > { %p698_p11 = pnand %p697_p5, %p693_p13 }
  0x24   : > { %701 = shalt.err (!%p698_p11)
}
  0x25   : > { %s792_s10 = smov 128   ;;  %s793_s14 = smov 8  }
  0x26   : > { %603 = dma.hbm_to_vmem [thread:$0]  (!%p899_p9), %s185_s23, 256, %s187_s25, %s175_s28, %s792_s10, %s792_s10, %s793_s14  }
  0x27   : > { %198 = sbr.rel (%p864_p8) target bundleno = 403 (0x193), region = 36  ;;  %s916_s20 = sand.u32 (!%p864_p8), 1, %s779_s16  }
  0x28   : > { %s538_s24 = sshll.u32 (!%p864_p8), %s916_s20, 4  ;;  %s201_s30 = scalar_lea.sflag (!%p864_p8), [#allocation3], %s916_s20 }
  0x29   : > { %s204_s5 = scalar_lea.vmem (!%p864_p8), [#allocation2], %s538_s24 }
  0x2c   : > { %762 = dma.done.wait (%p851_p4), %s201_s30, 256  }
  0x2d   : > { %764 = vsyncadd (%p851_p4), %s201_s30, 4294967040 }
  0x2e   : > { %766 = dma.done.wait (%p42_p1), [#allocation6], 1024  }
  0x2f   : > { %768 = vsyncadd (%p42_p1), [#allocation6], 4294966272  ;;  %v586_v0 = vld [vmem:[#allocation5 + $0x38] sm:$0xff]  ;;  %v585_v1 = vld [vmem:[#allocation5 + $0x30] sm:$0xff]  ;;  %s587_s27 = sshll.u32 %s842_s19, 4  ;;  %s234_s11 = scalar_lea.vmem [#allocation7], %s538_s24 }
  0x30   : > { %312 = vmatpush.bf16.msra.mxu0 %v586_v0  ;;  %332 = vmatpush.bf16.msra.mxu1 %v586_v0  ;;  %v584_v2 = vld [vmem:[#allocation5 + $0x28] sm:$0xff]  ;;  %v583_v3 = vld [vmem:[#allocation5 + $0x20] sm:$0xff]  ;;  %v582_v4 = vld [vmem:[#allocation5 + $0x18] sm:$0xff]  ;;  %s443_s7 = scalar_lea.hbm %s975_s4, %s587_s27  ;;  %s444_s12 = sshll.u32 %s234_s11, 4  ;;  %s445_s12 = int_to_ptr.vmem [resolvable:$true] %s444_s12 }
  0x31   : > { %379 = vmatpush.bf16.msra.mxu3 %v586_v0  ;;  %359 = vmatpush.bf16.msra.mxu2 %v586_v0  ;;  %v255_v5 = vld [vmem:[%s204_s5] sm:$0xff]  ;;  %v256_v6 = vld [vmem:[%s204_s5 + $0x8] sm:$0xff]  ;;  %s446_s13 = sshll.u32 %s443_s7, 4  ;;  %s432_s19 = scalar_lea.sflag [#allocation4], %s916_s20  ;;  %s447_s13 = int_to_ptr.hbm [resolvable:$true] %s446_s13 }
  0x32   : > { %v257_v7 = vpack.c.bf16 %v255_v5, %v255_v5  ;;  %v258_v8 = vpack.c.bf16 %v256_v6, %v256_v6  ;;  %v581_v9 = vld [vmem:[#allocation5 + $0x10] sm:$0xff]  ;;  %v580_v12 = vld [vmem:[#allocation5 + $0x8] sm:$0xff]  ;;  %v579_v17 = vld [vmem:[#allocation5] sm:$0xff]  ;;  %s731_s10 = sshra.s32 %s447_s13, 4  ;;  %s737_s5 = scalar_lea.hbm %s975_s4, 32  ;;  %s732_s10 = int_to_ptr.hbm [resolvable:$true] %s731_s10 }
  0x33   : > { %v651_v58 = vld [vmem:[%s973_s2] ss:$0 sm:$0xff]  ;;  %s733_s14 = scalar_lea.hbm %s732_s10, 16  ;;  %p738_p11 = scmp.lt.s32.totalorder %s732_s10, %s975_s4 }
  0x34   : > { %313 = vmatpush.bf16.msra.mxu0 %v585_v1  ;;  %333 = vmatpush.bf16.msra.mxu1 %v585_v1  ;;  %v259_v10 = vunpack.c.l.bf16 %v257_v7  ;;  %v260_v11 = vunpack.c.l.bf16 %v258_v8  ;;  %v328_v15 = vunpack.c.l.b16 %v257_v7  ;;  %v329_v16 = vunpack.c.l.b16 %v258_v8  ;;  %v652_v0 = vld [vmem:[%s974_s3] ss:$0 sm:$0xff]  ;;  %p734_p1 = scmp.ne.s32.totalorder %s732_s10, %s733_s14  ;;  %p739_p9 = scmp.lt.s32.totalorder %s737_s5, %s733_s14 }
  0x35   : > { %380 = vmatpush.bf16.msra.mxu3 %v585_v1  ;;  %360 = vmatpush.bf16.msra.mxu2 %v585_v1 }
  0x36   : > { %v261_v13 = vsub.f32 %v255_v5, %v259_v10  ;;  %v262_v14 = vsub.f32 %v256_v6, %v260_v11  ;;  %v330_v19 = vpack.c.b16 %v329_v16, %v328_v15  ;;  %p735_p4 = pnand %p734_p1, %p888_p7  ;;  %p740_p2 = por %p739_p9, %p738_p11 }
  0x38   : > { %314 = vmatpush.bf16.msra.mxu0 %v584_v2  ;;  %334 = vmatpush.bf16.msra.mxu1 %v584_v2  ;;  %v263_v18 = vpack.c.bf16 %v262_v14, %v261_v13  ;;  %p736_p8 = pneg %p735_p4 }
  0x39   : > { %381 = vmatpush.bf16.msra.mxu3 %v584_v2  ;;  %361 = vmatpush.bf16.msra.mxu2 %v584_v2 }
  0x3a   : > { %p741_p10 = pnand %p740_p2, %p736_p8 }
  0x3c   : > { %315 = vmatpush.bf16.msra.mxu0 %v583_v3  ;;  %335 = vmatpush.bf16.msra.mxu1 %v583_v3 }
  0x3d   : > { %382 = vmatpush.bf16.msra.mxu3 %v583_v3  ;;  %362 = vmatpush.bf16.msra.mxu2 %v583_v3 }
  0x40   : > { %316 = vmatpush.bf16.msra.mxu0 %v582_v4  ;;  %336 = vmatpush.bf16.msra.mxu1 %v582_v4 }
  0x41   : > { %383 = vmatpush.bf16.msra.mxu3 %v582_v4  ;;  %363 = vmatpush.bf16.msra.mxu2 %v582_v4 }
  0x44   : > { %317 = vmatpush.bf16.msra.mxu0 %v581_v9  ;;  %337 = vmatpush.bf16.msra.mxu1 %v581_v9 }
  0x45   : > { %384 = vmatpush.bf16.msra.mxu3 %v581_v9  ;;  %364 = vmatpush.bf16.msra.mxu2 %v581_v9 }
  0x48   : > { %318 = vmatpush.bf16.msra.mxu0 %v580_v12  ;;  %338 = vmatpush.bf16.msra.mxu1 %v580_v12 }
  0x49   : > { %385 = vmatpush.bf16.msra.mxu3 %v580_v12  ;;  %365 = vmatpush.bf16.msra.mxu2 %v580_v12 }
  0x4c   : > { %319 = vmatpush.bf16.msra.mxu0 %v579_v17  ;;  %339 = vmatpush.bf16.msra.mxu1 %v579_v17 }
  0x4d   : > { %386 = vmatpush.bf16.msra.mxu3 %v579_v17  ;;  %366 = vmatpush.bf16.msra.mxu2 %v579_v17 }
  0x4f   : > { %320 = vmatmul.bf16.vlgmr.msra.gmra.mxu0 %v263_v18  ;;  %340 = vmatmul.bf16.vlgmr.msra.gmra.mxu1 %v330_v19 }
  0xcc   : > { %v321_v20 = vpop.f32.mrf.mxu0  ;;  %v341_v21 = vpop.f32.mrf.mxu1 }
  0xcd   : > { %v342_v22 = vadd.f32 %v341_v21, %v321_v20 }
  0xcf   : > { %v346_v23 = vmul.f32 0.03125, %v342_v22 }
  0xd1   : > { %v348_v24 = vsub.f32 %v255_v5, %v346_v23 }
  0xd3   : > { %v350_v27 = vmul.f32 %v348_v24, %v348_v24 }
  0xd4   : > { %v323_v25 = vpop.f32.mrf.mxu0  ;;  %v343_v26 = vpop.f32.mrf.mxu1 }
  0xd5   : > { %v344_v28 = vadd.f32 %v343_v26, %v323_v25  ;;  %v352_v31 = vpack.c.bf16 %v350_v27, %v350_v27 }
  0xd7   : > { %v347_v29 = vmul.f32 0.03125, %v344_v28  ;;  %v354_v34 = vunpack.c.l.bf16 %v352_v31  ;;  %v375_v35 = vunpack.c.l.b16 %v352_v31 }
  0xd9   : > { %v349_v30 = vsub.f32 %v256_v6, %v347_v29  ;;  %v356_v39 = vsub.f32 %v350_v27, %v354_v34 }
  0xdb   : > { %v351_v32 = vmul.f32 %v349_v30, %v349_v30 }
  0xdd   : > { %v353_v33 = vpack.c.bf16 %v351_v32, %v351_v32 }
  0xdf   : > { %v376_v36 = vunpack.c.l.b16 %v353_v33  ;;  %v355_v37 = vunpack.c.l.bf16 %v353_v33 }
  0xe1   : > { %v377_v38 = vpack.c.b16 %v376_v36, %v375_v35  ;;  %v357_v40 = vsub.f32 %v351_v32, %v355_v37 }
  0xe3   : > { %387 = vmatmul.bf16.vlgmr.msra.gmra.mxu3 %v377_v38  ;;  %v358_v41 = vpack.c.bf16 %v357_v40, %v356_v39 }
  0xe5   : > { %367 = vmatmul.bf16.vlgmr.msra.gmra.mxu2 %v358_v41 }
 0x166   : > { %v388_v42 = vpop.f32.mrf.mxu3 }
 0x168   : > { %v368_v43 = vpop.f32.mrf.mxu2 }
 0x169   : > { %v389_v44 = vadd.f32 %v388_v42, %v368_v43 }
 0x16b   : > { %v393_v45 = vmul.f32 0.03125, %v389_v44 }
 0x16d   : > { %v395_v46 = vadd.f32 1e-06, %v393_v45 }
 0x16e   : > { %v390_v47 = vpop.f32.mrf.mxu3 }
 0x16f   : > { %653 = vrsqrt.f32 %v395_v46  ;;  %vm403_vm1 = vweird.f32 %v395_v46 }
 0x170   : > { %v370_v48 = vpop.f32.mrf.mxu2 }
 0x171   : > { %v391_v49 = vadd.f32 %v390_v47, %v370_v48 }
 0x173   : > { %v394_v50 = vmul.f32 0.03125, %v391_v49 }
 0x175   : > { %v654_v51 = vpop.eup %653  ;;  %v396_v52 = vadd.f32 1e-06, %v394_v50 }
 0x176   : > { %v398_v53 = vmul.f32 %v654_v51, %v395_v46  ;;  %vm404_vm0 = vweird.f32 %v654_v51 }
 0x177   : > { %655 = vrsqrt.f32 %v396_v52  ;;  %vm405_vm2 = vmor %vm403_vm1, %vm404_vm0  ;;  %vm413_vm4 = vweird.f32 %v396_v52 }
 0x178   : > { %v399_v54 = vmul.f32 %v654_v51, %v398_v53 }
 0x17a   : > { %v400_v55 = vmul.f32 0.5, %v399_v54 }
 0x17c   : > { %v401_v56 = vsub.f32 1.5, %v400_v55 }
 0x17d   : > { %v656_v57 = vpop.eup %655 }
 0x17e   : > { %v402_v59 = vmul.f32 %v654_v51, %v401_v56  ;;  %v408_v60 = vmul.f32 %v656_v57, %v396_v52  ;;  %vm414_vm3 = vweird.f32 %v656_v57 }
 0x17f   : > { %vm415_vm5 = vmor %vm413_vm4, %vm414_vm3 }
 0x180   : > { %v406_v61 = vsel %vm405_vm2, %v654_v51, %v402_v59  ;;  %v409_v62 = vmul.f32 %v656_v57, %v408_v60 }
 0x181   : > { %v420_v63 = vmul.f32 %v651_v58, %v406_v61 }
 0x182   : > { %v410_v1 = vmul.f32 0.5, %v409_v62 }
 0x183   : > { %v422_v2 = vmul.f32 %v420_v63, %v348_v24 }
 0x184   : > { %v411_v3 = vsub.f32 1.5, %v410_v1 }
 0x185   : > { %v427_v4 = vadd.f32 %v652_v0, %v422_v2 }
 0x186   : > { %v412_v5 = vmul.f32 %v656_v57, %v411_v3 }
 0x187   : > { %429 = vst [vmem:[%s234_s11] sm:$0xff] %v427_v4 }
 0x188   : > { %v416_v6 = vsel %vm415_vm5, %v656_v57, %v412_v5 }
 0x189   : > { %v421_v7 = vmul.f32 %v651_v58, %v416_v6 }
 0x18b   : > { %v423_v8 = vmul.f32 %v421_v7, %v349_v30 }
 0x18d   : > { %v428_v9 = vadd.f32 %v652_v0, %v423_v8 }
 0x18f   : > { %430 = vst [vmem:[%s234_s11 + $0x8] sm:$0xff] %v428_v9 }
 0x190   : > { %744 = shalt.err (!%p741_p10)
}
 0x191   : > { %s794_s20 = smov 128   ;;  %s795_s23 = smov 8  }
 0x192   : > { %594 = dma.vmem_to_hbm [thread:$0]  (%p888_p7), %s445_s12, 256, %s447_s13, %s432_s19, %s794_s20, %s794_s20, %s795_s23  }
 0x193 PF: > { %s461_s25 = sand.u32 1, %s775_s15   ;;  %p981_p12 = scmp.ge.s32.totalorder %s787_s18, 2 }
 0x194   : > { %s462_s27 = scalar_lea.sflag [#allocation4], %s461_s25 }
 0x195   : > { %p605_p13 = pnand %p981_p12, %p856_p6 }
 0x197   : > { %p606_p0 = pneg %p605_p13 }
 0x199   : > { %770 = dma.done.wait (%p606_p0), %s462_s27, 256  }
 0x19a   : > { %772 = vsyncadd (%p606_p0), %s462_s27, 4294967040  ;;  %p18_p3 = scmp.ge.s32.totalorder %s874_s29, 4   ;;  %s982_s15 = smov %s779_s16 }
 0x19b   : > { %s983_s16 = smov %s783_s17  ;;  %s984_s17 = smov %s884_s8 }
 0x19c   : > { %s985_s18 = smov %s874_s29  ;;  %20 = sbr.rel (!%p18_p3) target bundleno = 6 (0x6), region = 85 }
 0x1a1   :  { %468 = vsyncpa [#allocation3], 1 }
 0x1a2   :  { %470 = vsyncpa [#allocation3 + $0x1], 1 }
 0x1a3   :  { %471 = vsyncpa [#allocation6], 1 }
 0x1a4   :  { %472 = vsyncpa [#allocation4], 1 }
 0x1a5   :  { %474 = vsyncpa [#allocation4 + $0x1], 1 }

</bundles_post_ra>
